<compile_context>
chip_gen: v6e
topology: v6e:2x2x1
jax: 0.10.0
libtpu: 0.0.40
codegen_flags: <defaults>
</compile_context>

<pallas_src>
import functools

import jax
import jax.numpy as jnp
from jax.experimental import pallas as pl
from jax.experimental.pallas import tpu as pltpu


def _round_up(x, m):
    return (x + m - 1) // m * m


def vanet_kernel(x_ref, w_ref, q_ref, *, num_inputs, ip, lane):
    """One batch tile of the full VAnet forward (pure 3-matmul chain).

    x_ref : [TB, I]      raw input rows (I == full array width, no padding).
    w_ref : [R, lane]    packed params:
              rows [0, I)                  -> fc1 weights
              rows [ip, ip+lane)           -> fc2 weights (rows >= H are zero)
              rows [ip+lane, ip+2*lane)    -> fused dueling head Wq (rows >= H zero)
              row  ip+2*lane               -> b1
              row  ip+2*lane+8             -> b2
              row  ip+2*lane+16            -> bq (fused dueling bias)
    q_ref : [TB, lane]   lanes 0..Na-1 hold Q; the rest is zero padding.
    """
    x = x_ref[...]                                       # [TB, I]
    w1 = w_ref[0:num_inputs, :]                          # [I, lane]
    w2 = w_ref[ip:ip + lane, :]                          # [lane, lane]
    wq = w_ref[ip + lane:ip + 2 * lane, :]               # [lane, lane]
    rb = ip + 2 * lane
    b1 = w_ref[rb:rb + 1, :]                             # [1, lane]
    b2 = w_ref[rb + 8:rb + 9, :]                         # [1, lane]
    bq = w_ref[rb + 16:rb + 17, :]                       # [1, lane]

    # fc1 + relu  (explicit broadcast bias add; columns >= H stay zero)
    h1 = jnp.maximum(
        jnp.dot(x, w1, preferred_element_type=jnp.float32) + b1, 0.0)
    # fc2 + relu
    h2 = jnp.maximum(
        jnp.dot(h1, w2, preferred_element_type=jnp.float32) + b2, 0.0)
    # fused dueling head: Q = h2 @ Wq + bq  (dueling combine pre-folded into Wq/bq)
    q_ref[...] = (
        jnp.dot(h2, wq, preferred_element_type=jnp.float32) + bq
    ).astype(q_ref.dtype)


def _pack_params(params, num_inputs, hidden_dim, num_actions, ip, lane, dtype):
    """Pack all weights + biases into one lane-dense [ip + 2*lane + 24, lane] buffer.

    The dueling combine V + A - mean(A) is folded into the head weights:
        Wq = wa + wv - mean_cols(wa),   bq = ba + bv - mean(ba).
    Bias rows are stored at sublane-aligned offsets (multiples of 8).
    """
    I, H, Na = num_inputs, hidden_dim, num_actions

    wq = params["wa"] + params["wv"] - jnp.mean(params["wa"], axis=1, keepdims=True)
    bq = params["ba"] + params["bv"] - jnp.mean(params["ba"], axis=1, keepdims=True)

    R = ip + 2 * lane + 24
    buf = jnp.zeros((R, lane), jnp.float32)
    buf = buf.at[:I, :H].set(params["w1"])
    buf = buf.at[ip:ip + H, :H].set(params["w2"])
    buf = buf.at[ip + lane:ip + lane + H, :Na].set(wq)
    rb = ip + 2 * lane
    buf = buf.at[rb, :H].set(params["b1"][0])
    buf = buf.at[rb + 8, :H].set(params["b2"][0])
    buf = buf.at[rb + 16, :Na].set(bq[0])
    return buf.astype(dtype)


def vanet_forward(x, params, *, compute_dtype=jnp.float32, dense_output=False):
    """x: [B, num_inputs]; params: dict of transposed weights/biases.

    compute_dtype: jnp.float32 (exact PyTorch semantics) or jnp.bfloat16
      (halves x/param HBM bytes + native bf16 MXU path on v6e/v7x for
      large-batch sweeps; accumulation stays f32).
    dense_output: return the padded [B_pad, 128] block instead of slicing to
      [B, num_actions], so a downstream consumer can fuse the slice/reduction.
    """
    B, I = x.shape
    H = params["w1"].shape[1]
    Na = params["wa"].shape[1]

    # Lane width: keep at 128 (memory/latency bound; do NOT pad to 256).
    lane = max(128, _round_up(H, 128), _round_up(Na, 128))
    ip = _round_up(I, 8)                     # sublane-aligned fc1 row section

    packed = _pack_params(params, I, H, Na, ip, lane, compute_dtype)
    R = packed.shape[0]

    # Batch tiling: >= 2 grid steps whenever B allows (v7x megacore), tiles
    # up to ~512 rows, minimal over-padding.
    b = max(B, 1)
    tb = _round_up(pl.cdiv(b, max(2, pl.cdiv(b, 512))), 8)
    b_pad = _round_up(B, tb)

    x_in = x.astype(compute_dtype)
    if b_pad != B:
        # Only the batch dim is ever padded (no augmented feature columns).
        x_in = jnp.zeros((b_pad, I), compute_dtype).at[:B, :].set(x_in)

    itemsize = jnp.dtype(compute_dtype).itemsize
    cost = pl.CostEstimate(
        flops=2 * b_pad * lane * (I + 2 * lane),
        transcendentals=0,
        bytes_accessed=b_pad * I * itemsize + R * lane * itemsize + b_pad * lane * 4,
    )

    kernel = functools.partial(vanet_kernel, num_inputs=I, ip=ip, lane=lane)

    q_pad = pl.pallas_call(
        kernel,
        out_shape=jax.ShapeDtypeStruct((b_pad, lane), jnp.float32),
        grid=(b_pad // tb,),
        in_specs=[
            pl.BlockSpec((tb, I), lambda i: (i, 0)),        # x tile (zero-copy width)
            pl.BlockSpec((R, lane), lambda i: (0, 0)),      # params, VMEM-resident
        ],
        out_specs=pl.BlockSpec((tb, lane), lambda i: (i, 0)),  # lane-dense q tile
        compiler_params=pltpu.CompilerParams(
            dimension_semantics=("parallel",)),
        cost_estimate=cost,
    )(x_in, packed)

    if dense_output:
        return q_pad
    # TODO(synk): for replay-sweep consumers, fuse the downstream argmax /
    # action-gather into the kernel so the store shrinks from 128 to <=8 lanes.
    return q_pad[:B, :Na]


def init_params(key, num_inputs, hidden_dim, num_actions):
    """Deterministic PyTorch-Linear-style init (uniform +/- 1/sqrt(fan_in)).
    Weights are returned already transposed to [in, out]."""
    def linear(key, fan_in, fan_out):
        kw, kb = jax.random.split(key)
        bound = 1.0 / jnp.sqrt(jnp.float32(fan_in))
        w = jax.random.uniform(kw, (fan_in, fan_out), jnp.float32, -bound, bound)
        b = jax.random.uniform(kb, (1, fan_out), jnp.float32, -bound, bound)
        return w, b

    k1, k2, k3, k4 = jax.random.split(key, 4)
    w1, b1 = linear(k1, num_inputs, hidden_dim)
    w2, b2 = linear(k2, hidden_dim, hidden_dim)
    wa, ba = linear(k3, hidden_dim, num_actions)
    wv, bv = linear(k4, hidden_dim, 1)
    return {"w1": w1, "b1": b1, "w2": w2, "b2": b2,
            "wa": wa, "ba": ba, "wv": wv, "bv": bv}


def vanet_reference(x, p):
    """Pure-JAX reference mirroring the PyTorch forward exactly."""
    h1 = jnp.maximum(x @ p["w1"] + p["b1"], 0.0)
    h2 = jnp.maximum(h1 @ p["w2"] + p["b2"], 0.0)
    A = h2 @ p["wa"] + p["ba"]
    V = h2 @ p["wv"] + p["bv"]
    return V + A - A.mean(-1, keepdims=True)


if __name__ == "__main__":
    num_inputs, hidden_dim, num_actions = 4, 32, 6
    batch = 2

    key = jax.random.PRNGKey(0)
    kx, kp = jax.random.split(key)
    x = jax.random.normal(kx, (batch, num_inputs), dtype=jnp.float32)
    params = init_params(kp, num_inputs, hidden_dim, num_actions)

    q = vanet_forward(x, params)
    q = jax.block_until_ready(q)

    q_ref = vanet_reference(x, params)
    assert q.shape == (batch, num_actions)
    assert jnp.allclose(q, q_ref, atol=1e-4, rtol=1e-4), "mismatch vs reference"

    print("KERNEL_OK")
</pallas_src>

<mosaic_0001>
module attributes {stable_mosaic.version = 11 : i64} {
  func.func @vanet_kernel(%arg0: i32, %arg1: memref<8x4xf32, #tpu.memory_space<vmem>>, %arg2: memref<288x128xf32, #tpu.memory_space<vmem>>, %arg3: memref<8x128xf32, #tpu.memory_space<vmem>>) attributes {dimension_semantics = [#tpu.dimension_semantics<parallel>], iteration_bounds = array<i64: 1>, scalar_prefetch = 0 : i64, scratch_operands = 0 : i64, tpu.core_type = #tpu.core_type<tc>, window_params = [{transform_indices = @transform_0, window_bounds = array<i64: 8, 4>}, {pipeline_mode = #tpu.pipeline_mode<synchronous>, transform_indices = @transform_1, window_bounds = array<i64: 288, 128>}, {transform_indices = @transform_2, window_bounds = array<i64: 8, 128>}]} {
    %c0 = arith.constant 0 : index
    %c0_0 = arith.constant 0 : index
    %0 = vector.load %arg1[%c0, %c0_0] : memref<8x4xf32, #tpu.memory_space<vmem>>, vector<8x4xf32>
    %c0_1 = arith.constant 0 : index
    %c0_2 = arith.constant 0 : index
    %1 = vector.load %arg2[%c0_1, %c0_2] : memref<288x128xf32, #tpu.memory_space<vmem>>, vector<4x128xf32>
    %c8 = arith.constant 8 : index
    %c0_3 = arith.constant 0 : index
    %2 = vector.load %arg2[%c8, %c0_3] : memref<288x128xf32, #tpu.memory_space<vmem>>, vector<128x128xf32>
    %c136 = arith.constant 136 : index
    %c0_4 = arith.constant 0 : index
    %3 = vector.load %arg2[%c136, %c0_4] : memref<288x128xf32, #tpu.memory_space<vmem>>, vector<128x128xf32>
    %c264 = arith.constant 264 : index
    %c0_5 = arith.constant 0 : index
    %4 = vector.load %arg2[%c264, %c0_5] : memref<288x128xf32, #tpu.memory_space<vmem>>, vector<1x128xf32>
    %c272 = arith.constant 272 : index
    %c0_6 = arith.constant 0 : index
    %5 = vector.load %arg2[%c272, %c0_6] : memref<288x128xf32, #tpu.memory_space<vmem>>, vector<1x128xf32>
    %c280 = arith.constant 280 : index
    %c0_7 = arith.constant 0 : index
    %6 = vector.load %arg2[%c280, %c0_7] : memref<288x128xf32, #tpu.memory_space<vmem>>, vector<1x128xf32>
    %cst = arith.constant dense<0.000000e+00> : vector<8x128xf32>
    %7 = tpu.matmul %0, %1, %cst {dimension_numbers = #tpu.dot_dimension_numbers<[1], [0], [0], [1], [0, 0, 1, 1], [], []>} : vector<8x4xf32>, vector<4x128xf32>, vector<8x128xf32> -> vector<8x128xf32>
    %8 = vector.broadcast %4 : vector<1x128xf32> to vector<8x128xf32>
    %9 = arith.addf %7, %8 : vector<8x128xf32>
    %cst_8 = arith.constant 0.000000e+00 : f32
    %10 = vector.broadcast %cst_8 : f32 to vector<8x128xf32>
    %11 = arith.maximumf %9, %10 : vector<8x128xf32>
    %cst_9 = arith.constant dense<0.000000e+00> : vector<8x128xf32>
    %12 = tpu.matmul %11, %2, %cst_9 {dimension_numbers = #tpu.dot_dimension_numbers<[1], [0], [0], [1], [0, 0, 1, 1], [], []>} : vector<8x128xf32>, vector<128x128xf32>, vector<8x128xf32> -> vector<8x128xf32>
    %13 = vector.broadcast %5 : vector<1x128xf32> to vector<8x128xf32>
    %14 = arith.addf %12, %13 : vector<8x128xf32>
    %cst_10 = arith.constant 0.000000e+00 : f32
    %15 = vector.broadcast %cst_10 : f32 to vector<8x128xf32>
    %16 = arith.maximumf %14, %15 : vector<8x128xf32>
    %cst_11 = arith.constant dense<0.000000e+00> : vector<8x128xf32>
    %17 = tpu.matmul %16, %3, %cst_11 {dimension_numbers = #tpu.dot_dimension_numbers<[1], [0], [0], [1], [0, 0, 1, 1], [], []>} : vector<8x128xf32>, vector<128x128xf32>, vector<8x128xf32> -> vector<8x128xf32>
    %18 = vector.broadcast %6 : vector<1x128xf32> to vector<8x128xf32>
    %19 = arith.addf %17, %18 : vector<8x128xf32>
    %c0_12 = arith.constant 0 : index
    %c0_13 = arith.constant 0 : index
    %20 = vector.load %arg3[%c0_12, %c0_13] : memref<8x128xf32, #tpu.memory_space<vmem>>, vector<8x128xf32>
    tpu.vector_store %arg3[%c0_12, %c0_13], %19 {strides = array<i32>} : memref<8x128xf32, #tpu.memory_space<vmem>>, vector<8x128xf32>,
    return
  }
  func.func @transform_0(%arg0: i32) -> (i32, i32) {
    %c0_i32 = arith.constant 0 : i32
    %c0_i32_0 = arith.constant 0 : i32
    return %arg0, %c0_i32 : i32, i32
  }
  func.func @transform_1(%arg0: i32) -> (i32, i32) {
    %c0_i32 = arith.constant 0 : i32
    %c0_i32_0 = arith.constant 0 : i32
    %c0_i32_1 = arith.constant 0 : i32
    return %c0_i32, %c0_i32_0 : i32, i32
  }
  func.func @transform_2(%arg0: i32) -> (i32, i32) {
    %c0_i32 = arith.constant 0 : i32
    %c0_i32_0 = arith.constant 0 : i32
    return %arg0, %c0_i32 : i32, i32
  }
}

</mosaic_0001>

<bundles_post_ra>
// kernel: tpu_custom_call.1
= control target key start
LH: loop header
LB: loop body
LE: loop exit
PB: predicated region body
PF: predicated region fallthrough
CT: control target
= control target key end

     0   :  { %7 = vsyncpa [#allocation3], 0  ;;  %s546_s0 = inlined_call_operand.vmem [shape: f32[8,4], index: 0, kind: input, shape index: {}]   ;;  %s547_s1 = inlined_call_operand.hbm [shape: f32[288,128], index: 1, kind: input, shape index: {}]   ;;  %s548_s2 = inlined_call_operand.hbm [shape: f32[8,128], index: 2, kind: output, shape index: {}]  }
   0x1   :  { %8 = vsyncpa [#allocation4], 0  ;;  %s477_s9 = smov [#allocation2]  }
   0x2   :  { %s16_s10 = sshll.u32 %s477_s9, 4  ;;  %s17_s10 = int_to_ptr.vmem [resolvable:$true] %s16_s10 }
   0x3   :  { %s441_s11 = scalar_lea.vmem %s17_s10, 4608  ;;  %p446_p1 = scmp.lt.s32.totalorder %s17_s10, %s17_s10 }
   0x4   :  { %p442_p0 = scmp.ne.s32.totalorder %s17_s10, %s441_s11  ;;  %p447_p2 = scmp.lt.s32.totalorder %s441_s11, %s441_s11 }
   0x6   :  { %p448_p3 = por %p447_p2, %p446_p1 }
   0x8   :  { %p449_p4 = pnand %p448_p3, %p442_p0 }
   0xa   :  { %452 = shalt.err (!%p449_p4)
}
   0xb   :  { %s478_s12 = smov 128   ;;  %s479_s13 = smov 8  }
   0xc   :  { %22 = dma.hbm_to_vmem [thread:$0]  %s547_s1, 4608, %s17_s10, [#allocation3], %s478_s12, %s478_s12, %s479_s13  }
   0xd   :  { %473 = dma.done.wait [#allocation3], 4608  }
   0xe   :  { %474 = vsyncadd [#allocation3], 4294962688  ;;  %v480_v0 = vmov 0.0   ;;  %vm481_vm0 = vmmov 0   ;;  %vm71_vm1 = vcmask 1043456   ;;  %vm67_vm2 = vcmask 31744  }
   0xf   :  { %352 = vmatprep.subr.mxu0 %v480_v0  ;;  %354 = vmatprep.mubr.msk.f32.mxu0 %vm481_vm0, %v480_v0  ;;  %v27_v1 = vld [vmem:[#allocation2] sm:$0xf]  ;;  %v42_v4 = vld [vmem:[#allocation2 + $0x78] sm:$0xff]  ;;  %v41_v5 = vld [vmem:[#allocation2 + $0x70] sm:$0xff] }
  0x10   :  { %357 = vmatprep.subr.mxu1 %v480_v0  ;;  %389 = vmatprep.mubr.msk.f32.mxu1 %vm481_vm0, %v480_v0  ;;  %v26_v2 = vld [vmem:[%s546_s0] sm:$0xff]  ;;  %v40_v6 = vld [vmem:[#allocation2 + $0x68] sm:$0xff]  ;;  %v38_v8 = vld [vmem:[#allocation2 + $0x58] sm:$0xff]  ;;  %s482_s0 = smov [#allocation5]  }
  0x11   :  { %v43_v3 = vld [vmem:[#allocation2 + $0x80] sm:$0xff]  ;;  %353 = vmatpush3.msk.msra.mxu0 %vm71_vm1, %v27_v1  ;;  %v37_v9 = vld [vmem:[#allocation2 + $0x50] sm:$0xff]  ;;  %v36_v10 = vld [vmem:[#allocation2 + $0x48] sm:$0xff]  ;;  %s302_s1 = sshll.u32 %s482_s0, 4  ;;  %s303_s1 = int_to_ptr.vmem [resolvable:$true] %s302_s1 }
  0x12   :  { %358 = vmatpush3.msra.mxu1 %v43_v3  ;;  %355 = vmatmul.mubr.msk.f32.vlgmr.msra.gmra.mxu0 %vm67_vm2, %v26_v2  ;;  %v39_v7 = vld [vmem:[#allocation2 + $0x60] sm:$0xff]  ;;  %v34_v12 = vld [vmem:[#allocation2 + $0x38] sm:$0xff]  ;;  %v33_v13 = vld [vmem:[#allocation2 + $0x30] sm:$0xff]  ;;  %s453_s18 = scalar_lea.vmem %s303_s1, 128  ;;  %p458_p6 = scmp.lt.s32.totalorder %s303_s1, %s303_s1 }
  0x13   :  { %359 = vmatprep.subr.mxu1 %v480_v0  ;;  %392 = vmatprep.subr.mxu0 %v480_v0  ;;  %v35_v11 = vld [vmem:[#allocation2 + $0x40] sm:$0xff]  ;;  %v32_v14 = vld [vmem:[#allocation2 + $0x28] sm:$0xff]  ;;  %v30_v16 = vld [vmem:[#allocation2 + $0x18] sm:$0xff]  ;;  %p454_p5 = scmp.ne.s32.totalorder %s303_s1, %s453_s18  ;;  %p459_p7 = scmp.lt.s32.totalorder %s453_s18, %s453_s18 }
  0x14   :  { %360 = vmatpush3.msra.mxu1 %v42_v4  ;;  %424 = vmatprep.mubr.msk.f32.mxu0 %vm481_vm0, %v480_v0  ;;  %v31_v15 = vld [vmem:[#allocation2 + $0x20] sm:$0xff]  ;;  %v29_v17 = vld [vmem:[#allocation2 + $0x10] sm:$0xff]  ;;  %v28_v18 = vld [vmem:[#allocation2 + $0x8] sm:$0xff] }
  0x15   :  { %361 = vmatprep.subr.mxu1 %v480_v0  ;;  %v59_v19 = vld [vmem:[#allocation2 + $0x100] sm:$0xff]  ;;  %v58_v20 = vld [vmem:[#allocation2 + $0xf8] sm:$0xff]  ;;  %v57_v21 = vld [vmem:[#allocation2 + $0xf0] sm:$0xff]  ;;  %p460_p8 = por %p459_p7, %p458_p6 }
  0x16   :  { %362 = vmatpush3.msra.mxu1 %v41_v5  ;;  %393 = vmatpush3.msra.mxu0 %v59_v19  ;;  %v56_v22 = vld [vmem:[#allocation2 + $0xe8] sm:$0xff]  ;;  %v55_v23 = vld [vmem:[#allocation2 + $0xe0] sm:$0xff]  ;;  %v54_v24 = vld [vmem:[#allocation2 + $0xd8] sm:$0xff] }
  0x17   :  { %363 = vmatprep.subr.mxu1 %v480_v0  ;;  %394 = vmatprep.subr.mxu0 %v480_v0  ;;  %v53_v25 = vld [vmem:[#allocation2 + $0xd0] sm:$0xff]  ;;  %v52_v26 = vld [vmem:[#allocation2 + $0xc8] sm:$0xff]  ;;  %v51_v27 = vld [vmem:[#allocation2 + $0xc0] sm:$0xff]  ;;  %p461_p9 = pnand %p460_p8, %p454_p5 }
  0x18   :  { %364 = vmatpush3.msra.mxu1 %v40_v6  ;;  %395 = vmatpush3.msra.mxu0 %v58_v20  ;;  %v50_v28 = vld [vmem:[#allocation2 + $0xb8] sm:$0xff]  ;;  %v49_v29 = vld [vmem:[#allocation2 + $0xb0] sm:$0xff]  ;;  %v48_v30 = vld [vmem:[#allocation2 + $0xa8] sm:$0xff] }
  0x19   :  { %365 = vmatprep.subr.mxu1 %v480_v0  ;;  %396 = vmatprep.subr.mxu0 %v480_v0  ;;  %v47_v31 = vld [vmem:[#allocation2 + $0xa0] sm:$0xff]  ;;  %v311_v32 = vld [vmem:[#allocation2 + $0x108] ss:$0 sm:$0xff]  ;;  %v46_v37 = vld [vmem:[#allocation2 + $0x98] sm:$0xff] }
  0x1a   :  { %366 = vmatpush3.msra.mxu1 %v39_v7  ;;  %397 = vmatpush3.msra.mxu0 %v57_v21  ;;  %v45_v38 = vld [vmem:[#allocation2 + $0x90] sm:$0xff]  ;;  %v44_v39 = vld [vmem:[#allocation2 + $0x88] sm:$0xff]  ;;  %v315_v45 = vld [vmem:[#allocation2 + $0x118] ss:$0 sm:$0xff] }
  0x1b   :  { %367 = vmatprep.subr.mxu1 %v480_v0  ;;  %398 = vmatprep.subr.mxu0 %v480_v0  ;;  %v314_v40 = vld [vmem:[#allocation2 + $0x110] ss:$0 sm:$0xff] }
  0x1c   :  { %368 = vmatpush3.msra.mxu1 %v38_v8  ;;  %399 = vmatpush3.msra.mxu0 %v56_v22 }
  0x1d   :  { %369 = vmatprep.subr.mxu1 %v480_v0  ;;  %400 = vmatprep.subr.mxu0 %v480_v0 }
  0x1e   :  { %370 = vmatpush3.msra.mxu1 %v37_v9  ;;  %401 = vmatpush3.msra.mxu0 %v55_v23 }
  0x1f   :  { %371 = vmatprep.subr.mxu1 %v480_v0  ;;  %402 = vmatprep.subr.mxu0 %v480_v0 }
  0x20   :  { %372 = vmatpush3.msra.mxu1 %v36_v10  ;;  %403 = vmatpush3.msra.mxu0 %v54_v24 }
  0x21   :  { %373 = vmatprep.subr.mxu1 %v480_v0  ;;  %404 = vmatprep.subr.mxu0 %v480_v0 }
  0x22   :  { %374 = vmatpush3.msra.mxu1 %v35_v11  ;;  %405 = vmatpush3.msra.mxu0 %v53_v25 }
  0x23   :  { %375 = vmatprep.subr.mxu1 %v480_v0  ;;  %406 = vmatprep.subr.mxu0 %v480_v0 }
  0x24   :  { %376 = vmatpush3.msra.mxu1 %v34_v12  ;;  %407 = vmatpush3.msra.mxu0 %v52_v26 }
  0x25   :  { %377 = vmatprep.subr.mxu1 %v480_v0  ;;  %408 = vmatprep.subr.mxu0 %v480_v0 }
  0x26   :  { %378 = vmatpush3.msra.mxu1 %v33_v13  ;;  %409 = vmatpush3.msra.mxu0 %v51_v27 }
  0x27   :  { %379 = vmatprep.subr.mxu1 %v480_v0  ;;  %410 = vmatprep.subr.mxu0 %v480_v0 }
  0x28   :  { %380 = vmatpush3.msra.mxu1 %v32_v14  ;;  %411 = vmatpush3.msra.mxu0 %v50_v28 }
  0x29   :  { %381 = vmatprep.subr.mxu1 %v480_v0  ;;  %412 = vmatprep.subr.mxu0 %v480_v0 }
  0x2a   :  { %382 = vmatpush3.msra.mxu1 %v31_v15  ;;  %413 = vmatpush3.msra.mxu0 %v49_v29 }
  0x2b   :  { %383 = vmatprep.subr.mxu1 %v480_v0  ;;  %414 = vmatprep.subr.mxu0 %v480_v0 }
  0x2c   :  { %384 = vmatpush3.msra.mxu1 %v30_v16  ;;  %415 = vmatpush3.msra.mxu0 %v48_v30 }
  0x2d   :  { %385 = vmatprep.subr.mxu1 %v480_v0  ;;  %416 = vmatprep.subr.mxu0 %v480_v0 }
  0x2e   :  { %386 = vmatpush3.msra.mxu1 %v29_v17  ;;  %417 = vmatpush3.msra.mxu0 %v47_v31 }
  0x2f   :  { %387 = vmatprep.subr.mxu1 %v480_v0  ;;  %418 = vmatprep.subr.mxu0 %v480_v0 }
  0x30   :  { %388 = vmatpush3.msra.mxu1 %v28_v18  ;;  %419 = vmatpush3.msra.mxu0 %v46_v37 }
  0x31   :  { %420 = vmatprep.subr.mxu0 %v480_v0 }
  0x32   :  { %421 = vmatpush3.msra.mxu0 %v45_v38 }
  0x33   :  { %422 = vmatprep.subr.mxu0 %v480_v0 }
  0x34   :  { %423 = vmatpush3.msra.mxu0 %v44_v39 }
  0xd2   :  { %v141_v33 = vpop.f32.mrf.mxu0 }
  0xd3   :  { %v142_v34 = vadd.f32 %v311_v32, %v141_v33 }
  0xd4   :  { %v356_v35 = vpop.f32.mrf.mxu0 }
  0xd5   :  { %v145_v36 = vmax.f32 %v142_v34, 0.0 }
  0xd7   :  { %390 = vmatmul.mubr.f32.vlgmr.msra.gmra.mxu1 %v145_v36 }
 0x197   :  { %v216_v41 = vpop.f32.mrf.mxu1 }
 0x198   :  { %v217_v42 = vadd.f32 %v314_v40, %v216_v41 }
 0x199   :  { %v391_v43 = vpop.f32.mrf.mxu1 }
 0x19a   :  { %v220_v44 = vmax.f32 %v217_v42, 0.0 }
 0x19c   :  { %425 = vmatmul.mubr.f32.vlgmr.msra.gmra.mxu0 %v220_v44 }
 0x25c   :  { %v291_v46 = vpop.f32.mrf.mxu0 }
 0x25d   :  { %v292_v47 = vadd.f32 %v315_v45, %v291_v46 }
 0x25e   :  { %v426_v48 = vpop.f32.mrf.mxu0 }
 0x25f   :  { %295 = vst [vmem:[#allocation5] sm:$0xff] %v292_v47 }
 0x260   :  { %464 = shalt.err (!%p461_p9)
}
 0x261   :  { %305 = dma.vmem_to_hbm [thread:$0]  %s303_s1, 128, %s548_s2, [#allocation4]  }
 0x262   :  { %475 = dma.done.wait [#allocation4], 128  }
 0x263   :  { %476 = vsyncadd [#allocation4], 4294967168 }
 0x264   :  { %309 = vsyncpa [#allocation3], 1 }
 0x265   :  { %310 = vsyncpa [#allocation4], 1 }

</bundles_post_ra>
